<compile_context>
chip_gen: v5e
topology: v5e:2x2
jax: 0.10.0
libtpu: 0.0.40
codegen_flags: <defaults>
</compile_context>

<pallas_src>
import math
from itertools import chain

import numpy as np
import jax
import jax.numpy as jnp
from jax import lax
from jax.experimental import pallas as pl
from jax.experimental.pallas import tpu as pltpu


# ----------------------------------------------------------------------------
# Pallas kernel
# ----------------------------------------------------------------------------
def _make_pe_kernel(n_idx_cols, m2, tile_rows, lanes, use_mxu):
    """One output tile:  o[r, :] = multihot(idx[r, :]) @ P2   (bias pre-folded).

    refs:
      idx_ref : (tile_rows, n_idx_cols) int32 — table row per (folded row, axis,
                lane-group), already offset so all targets are disjoint columns.
      p_ref   : (m2, lanes) float32 — concatenated (block-diagonal if lane-folded)
                projected tables with the bias folded in; VMEM-resident (constant
                index_map) across every grid step.
      o_ref   : (tile_rows, lanes) out_dtype

    Multi-hot entries are exact 0.0/1.0 and P2 stays f32, so the MXU contraction
    is an exact gather-and-sum.  Rows of a ragged last tile load garbage idx
    values and may compute garbage, but Pallas masks those rows on the output
    store — benign, do not "fix" by removing the mask or the ragged grid.
    """

    def kernel(idx_ref, p_ref, o_ref):
        idx = idx_ref[...]                                          # (T, J) i32
        col = lax.broadcasted_iota(jnp.int32, (tile_rows, m2), 1)   # column ids
        mh = (idx[:, 0:1] == col).astype(jnp.float32)
        for j in range(1, n_idx_cols):
            mh = mh + (idx[:, j:j + 1] == col).astype(jnp.float32)
        if use_mxu:
            out = jnp.dot(mh, p_ref[...], preferred_element_type=jnp.float32)
        else:
            # Degenerate tables (m2 < 8, e.g. squeeze_dims=None): cheap VPU
            # broadcast/accumulate instead of a sub-tile MXU matmul.
            out = mh[:, 0:1] * p_ref[0:1, :]
            for m in range(1, m2):
                out = out + mh[:, m:m + 1] * p_ref[m:m + 1, :]
        o_ref[...] = out.astype(o_ref.dtype)

    return kernel


def _pick_tile_rows(n_rows, target=1024):
    """Row-tile heuristic.

    ~1024-row (x128-lane) tiles are the measured v6e sweet spot (~86% of the
    HBM roofline; 128-row tiles only ~29%), so do NOT shrink tiles for
    "parallelism" — the grid is a serial loop on one TensorCore on v5e/v6e.
    For v7x megacore we additionally cap the tile at ceil(n/2) once there is
    enough work, so the "parallel" row axis has >= 2 steps to shard over 2 TCs.
    """
    if n_rows <= 256:
        return n_rows                      # tiny: single step, overhead-bound anyway
    half = -(-n_rows // 2)
    half = -(-half // 8) * 8               # round up to a sublane multiple
    t = min(target, half)
    # Prefer a nearby exact divisor so there is no ragged (masked) last tile.
    for cand in range(t, max(t - 256, 7), -8):
        if n_rows % cand == 0:
            return cand
    return t                               # ragged last tile (Pallas masks the store)


def squeeze_pos_encoding_pallas(idx2, p2, *, out_dtype=jnp.float32, tile_rows=None):
    """out2[r, :] = multihot(idx2[r, :]) @ p2, tiled over rows on TPU.

    idx2 : (R, J) int32, J = D * G   (G = lane-fold factor)
    p2   : (M2, L) float32,          L = G * embed_dims
    """
    n_rows, n_idx_cols = (int(s) for s in idx2.shape)
    m2, lanes = (int(s) for s in p2.shape)

    if tile_rows is None:
        tile_rows = _pick_tile_rows(n_rows)
    tile_rows = min(int(tile_rows), n_rows)
    if tile_rows != n_rows and tile_rows % 8 != 0:   # keep the (8,128) block rule
        tile_rows = max(8, (tile_rows // 8) * 8)
        tile_rows = min(tile_rows, n_rows)

    grid = (pl.cdiv(n_rows, tile_rows),)
    kernel = _make_pe_kernel(n_idx_cols, m2, tile_rows, lanes, use_mxu=m2 >= 8)

    return pl.pallas_call(
        kernel,
        out_shape=jax.ShapeDtypeStruct((n_rows, lanes), out_dtype),
        grid=grid,
        in_specs=[
            # Single combined index stream (one DMA / padded buffer per step).
            pl.BlockSpec((tile_rows, n_idx_cols), lambda t: (t, 0)),
            # Projected tables: constant index_map -> DMA'd once, VMEM-resident.
            pl.BlockSpec((m2, lanes), lambda t: (0, 0)),
        ],
        out_specs=pl.BlockSpec((tile_rows, lanes), lambda t: (t, 0)),
        compiler_params=pltpu.CompilerParams(
            dimension_semantics=("parallel",)),   # v7x: row tiles shard over 2 TCs
    )(idx2, p2)


# ----------------------------------------------------------------------------
# Module re-implementation
# ----------------------------------------------------------------------------
class LearnableSqueezePositionalEncodingPallas:
    def __init__(self, num_embeds, embed_dims, squeeze_dims=None, *, key,
                 out_dtype=jnp.float32, tile_rows=None):
        self.shape = tuple(int(s) for s in num_embeds)
        self.embed_dims = int(embed_dims)
        self.squeeze_dims = (tuple(int(q) for q in squeeze_dims)
                             if squeeze_dims else None)
        self.out_dtype = out_dtype
        self.tile_rows = tile_rows

        D = len(self.shape)
        half = self.embed_dims // 2
        # Per-axis extents exactly as the PyTorch module computes them:
        # s_i*q_i with squeeze_dims, otherwise BOTH table rows and extent are 1.
        if self.squeeze_dims:
            s_dims, q_dims = self.shape, self.squeeze_dims
        else:
            s_dims, q_dims = (1,) * D, (1,) * D
        self._full = tuple(s * q for s, q in zip(s_dims, q_dims))
        self._n_rows = int(np.prod(self._full))

        # Lane-fold factor: pack G consecutive output rows into the lane dim so
        # output tiles are 128-lane dense (unmasked stores) when embed_dims < 128.
        C = self.embed_dims
        G = 128 // C if (C < 128 and 128 % C == 0) else 1
        if G > 1 and self._n_rows % G != 0:
            G = 1
        self._G = G

        # Parameters (same distributions as PyTorch defaults).
        keys = jax.random.split(key, D + 2)
        self.embed_weights = [
            jax.random.normal(keys[i], (self._full[i], half), dtype=jnp.float32)
            for i in range(D)
        ]
        fan_in = half * D
        bound = 1.0 / math.sqrt(fan_in)
        # stored as (in_features, out_features) so the projection is x @ W
        self.proj_w = jax.random.uniform(keys[D], (fan_in, self.embed_dims),
                                         minval=-bound, maxval=bound,
                                         dtype=jnp.float32)
        self.proj_b = jax.random.uniform(keys[D + 1], (self.embed_dims,),
                                         minval=-bound, maxval=bound,
                                         dtype=jnp.float32)

        # Static, parameter-independent row indices -> precomputed on host once.
        self._idx2, self._m_total = self._precompute_indices(s_dims, q_dims, G)

    @staticmethod
    def _precompute_indices(s_dims, q_dims, G):
        """Combined index array idx2[r, g*D + i] = off_i + g*M_total + c_i(r*G + g).

        Row n of the flattened squeeze-permuted output decomposes row-major as
        (a_0..a_{D-1}, b_0..b_{D-1}) over extents (s_0..s_{D-1}, q_0..q_{D-1});
        the table row for axis i is c_i(n) = a_i*q_i + b_i.
        """
        D = len(s_dims)
        m_sizes = [s * q for s, q in zip(s_dims, q_dims)]
        offsets = np.cumsum([0] + m_sizes)[:-1]
        m_total = int(sum(m_sizes))

        ext = list(s_dims) + list(q_dims)
        n_rows = int(np.prod(ext))
        strides = np.ones(2 * D, dtype=np.int64)
        for k in range(2 * D - 2, -1, -1):
            strides[k] = strides[k + 1] * ext[k + 1]
        n = np.arange(n_rows, dtype=np.int64)

        cols = []
        for i in range(D):
            a = (n // strides[i]) % s_dims[i]
            b = (n // strides[D + i]) % q_dims[i]
            cols.append(a * q_dims[i] + b + offsets[i])
        idx = np.stack(cols, axis=1).astype(np.int32)          # (n_rows, D)

        n_folded = n_rows // G
        idx = idx.reshape(n_folded, G, D)
        idx = idx + (np.arange(G, dtype=np.int32) * m_total)[None, :, None]
        return jnp.asarray(idx.reshape(n_folded, G * D)), m_total

    def __call__(self):
        D = len(self.shape)
        half = self.embed_dims // 2
        C = self.embed_dims
        # Tiny per-axis projected tables P_i = E_i @ W_i (negligible FLOPs/bytes);
        # bias folded into the axis-0 block -> no separate bias input to the kernel.
        p_list = [self.embed_weights[i] @ self.proj_w[i * half:(i + 1) * half, :]
                  for i in range(D)]
        p_list[0] = p_list[0] + self.proj_b[None, :]
        p_cat = jnp.concatenate(p_list, axis=0)                  # (M_total, C)
        if self._G > 1:
            # Block-diagonal replication for the lane fold: lane group g reads
            # rows [g*M_total, (g+1)*M_total) of P2 into lanes [g*C, (g+1)*C).
            p2 = jnp.kron(jnp.eye(self._G, dtype=p_cat.dtype), p_cat)
        else:
            p2 = p_cat

        out2 = squeeze_pos_encoding_pallas(self._idx2, p2,
                                           out_dtype=self.out_dtype,
                                           tile_rows=self.tile_rows)
        out = out2.reshape(-1, C)        # row-major unfold of the lane fold: free
        if self.squeeze_dims:
            return out.reshape(1, -1, C)
        return out.reshape((1,) + (1,) * D + (C,))

    # Pure-JAX reference: direct port of the PyTorch forward, for verification.
    def reference(self):
        D = len(self.shape)
        half = self.embed_dims // 2
        embeds = []
        for i in range(D):
            shp = [1] * D
            shp[i] = self._full[i]
            e = self.embed_weights[i].reshape(1, *shp, half)
            e = jnp.broadcast_to(e, (1, *self._full, half))
            embeds.append(e)
        embed = jnp.concatenate(embeds, axis=-1)
        if self.squeeze_dims:
            inter = list(chain(*[(self.shape[i], self.squeeze_dims[i])
                                 for i in range(D)]))
            embed = embed.reshape(1, *inter, embed.shape[-1])
            dims = ([0] + [2 * i + 1 for i in range(D)]
                    + [2 * i + 2 for i in range(D)] + [2 * D + 1])
            embed = jnp.transpose(embed, dims)
            embed = embed.reshape(1, -1, embed.shape[-1])
        return embed @ self.proj_w + self.proj_b


# ----------------------------------------------------------------------------
if __name__ == "__main__":
    def _check(num_embeds, embed_dims, squeeze_dims, key, *, tile_rows=None,
               out_dtype=jnp.float32, atol=1e-5, rtol=1e-5):
        mod = LearnableSqueezePositionalEncodingPallas(
            num_embeds, embed_dims, squeeze_dims, key=key,
            out_dtype=out_dtype, tile_rows=tile_rows)
        out = jax.block_until_ready(mod())
        ref = mod.reference()
        assert out.shape == ref.shape, (out.shape, ref.shape)
        assert out.dtype == out_dtype, (out.dtype, out_dtype)
        o32 = out.astype(jnp.float32)
        err = jnp.max(jnp.abs(o32 - ref))
        assert jnp.allclose(o32, ref, atol=atol, rtol=rtol), f"max abs err {err}"
        return out

    root = jax.random.PRNGKey(0)
    k1, k2, k3, k4, k5, k6 = jax.random.split(root, 6)

    # 1) original toy configuration (lane fold G=4 -> 128-lane-dense output tiles)
    out = _check((4, 4), 32, (2, 2), k1)
    assert out.shape == (1, 64, 32), out.shape

    # 2) 3-D grid, forced multi-tile row grid -> exercises pipelining / megacore path
    out = _check((8, 4, 2), 64, (2, 2, 2), k2, tile_rows=64)
    assert out.shape == (1, 512, 64), out.shape

    # 3) larger 3-D grid, default tile picker -> two lane-dense 1024-row tiles
    out = _check((16, 8, 4), 64, (2, 2, 2), k3)
    assert out.shape == (1, 4096, 64), out.shape

    # 4) non-power-of-two extents, no lane fold possible (90 % 4 != 0), single block
    out = _check((5, 3), 32, (2, 3), k4)
    assert out.shape == (1, 90, 32), out.shape

    # 5) squeeze_dims=None degenerate path (PyTorch collapses every extent to 1)
    out = _check((4, 4), 32, None, k5)
    assert out.shape == (1, 1, 1, 32), out.shape

    # 6) bf16 output write (halves HBM bytes on the binding resource), f32 accumulate
    out = _check((4, 4), 32, (2, 2), k6, out_dtype=jnp.bfloat16, atol=2e-2, rtol=2e-2)
    assert out.shape == (1, 64, 32), out.shape

    print("KERNEL_OK")
</pallas_src>

<mosaic_0001>
module attributes {stable_mosaic.version = 11 : i64} {
  func.func @kernel(%arg0: i32, %arg1: memref<16x8xi32, #tpu.memory_space<vmem>>, %arg2: memref<64x128xf32, #tpu.memory_space<vmem>>, %arg3: memref<16x128xf32, #tpu.memory_space<vmem>>) attributes {dimension_semantics = [#tpu.dimension_semantics<parallel>], iteration_bounds = array<i64: 1>, scalar_prefetch = 0 : i64, scratch_operands = 0 : i64, tpu.core_type = #tpu.core_type<tc>, window_params = [{transform_indices = @transform_0, window_bounds = array<i64: 16, 8>}, {pipeline_mode = #tpu.pipeline_mode<synchronous>, transform_indices = @transform_1, window_bounds = array<i64: 64, 128>}, {transform_indices = @transform_2, window_bounds = array<i64: 16, 128>}]} {
    %c0 = arith.constant 0 : index
    %c0_0 = arith.constant 0 : index
    %0 = vector.load %arg1[%c0, %c0_0] : memref<16x8xi32, #tpu.memory_space<vmem>>, vector<16x8xi32>
    %1 = tpu.iota {dimensions = array<i32: 1>} : vector<16x64xi32>
    %2 = vector.extract_strided_slice %0 {offsets = [0, 0], sizes = [16, 1], strides = [1, 1]} : vector<16x8xi32> to vector<16x1xi32>
    %3 = vector.broadcast %2 : vector<16x1xi32> to vector<16x64xi32>
    %4 = arith.cmpi eq, %3, %1 : vector<16x64xi32>
    %5 = arith.extui %4 : vector<16x64xi1> to vector<16x64xi32>
    %6 = arith.sitofp %5 : vector<16x64xi32> to vector<16x64xf32>
    %7 = vector.extract_strided_slice %0 {offsets = [0, 1], sizes = [16, 1], strides = [1, 1]} : vector<16x8xi32> to vector<16x1xi32>
    %8 = vector.broadcast %7 : vector<16x1xi32> to vector<16x64xi32>
    %9 = arith.cmpi eq, %8, %1 : vector<16x64xi32>
    %10 = arith.extui %9 : vector<16x64xi1> to vector<16x64xi32>
    %11 = arith.sitofp %10 : vector<16x64xi32> to vector<16x64xf32>
    %12 = arith.addf %6, %11 : vector<16x64xf32>
    %13 = vector.extract_strided_slice %0 {offsets = [0, 2], sizes = [16, 1], strides = [1, 1]} : vector<16x8xi32> to vector<16x1xi32>
    %14 = vector.broadcast %13 : vector<16x1xi32> to vector<16x64xi32>
    %15 = arith.cmpi eq, %14, %1 : vector<16x64xi32>
    %16 = arith.extui %15 : vector<16x64xi1> to vector<16x64xi32>
    %17 = arith.sitofp %16 : vector<16x64xi32> to vector<16x64xf32>
    %18 = arith.addf %12, %17 : vector<16x64xf32>
    %19 = vector.extract_strided_slice %0 {offsets = [0, 3], sizes = [16, 1], strides = [1, 1]} : vector<16x8xi32> to vector<16x1xi32>
    %20 = vector.broadcast %19 : vector<16x1xi32> to vector<16x64xi32>
    %21 = arith.cmpi eq, %20, %1 : vector<16x64xi32>
    %22 = arith.extui %21 : vector<16x64xi1> to vector<16x64xi32>
    %23 = arith.sitofp %22 : vector<16x64xi32> to vector<16x64xf32>
    %24 = arith.addf %18, %23 : vector<16x64xf32>
    %25 = vector.extract_strided_slice %0 {offsets = [0, 4], sizes = [16, 1], strides = [1, 1]} : vector<16x8xi32> to vector<16x1xi32>
    %26 = vector.broadcast %25 : vector<16x1xi32> to vector<16x64xi32>
    %27 = arith.cmpi eq, %26, %1 : vector<16x64xi32>
    %28 = arith.extui %27 : vector<16x64xi1> to vector<16x64xi32>
    %29 = arith.sitofp %28 : vector<16x64xi32> to vector<16x64xf32>
    %30 = arith.addf %24, %29 : vector<16x64xf32>
    %31 = vector.extract_strided_slice %0 {offsets = [0, 5], sizes = [16, 1], strides = [1, 1]} : vector<16x8xi32> to vector<16x1xi32>
    %32 = vector.broadcast %31 : vector<16x1xi32> to vector<16x64xi32>
    %33 = arith.cmpi eq, %32, %1 : vector<16x64xi32>
    %34 = arith.extui %33 : vector<16x64xi1> to vector<16x64xi32>
    %35 = arith.sitofp %34 : vector<16x64xi32> to vector<16x64xf32>
    %36 = arith.addf %30, %35 : vector<16x64xf32>
    %37 = vector.extract_strided_slice %0 {offsets = [0, 6], sizes = [16, 1], strides = [1, 1]} : vector<16x8xi32> to vector<16x1xi32>
    %38 = vector.broadcast %37 : vector<16x1xi32> to vector<16x64xi32>
    %39 = arith.cmpi eq, %38, %1 : vector<16x64xi32>
    %40 = arith.extui %39 : vector<16x64xi1> to vector<16x64xi32>
    %41 = arith.sitofp %40 : vector<16x64xi32> to vector<16x64xf32>
    %42 = arith.addf %36, %41 : vector<16x64xf32>
    %43 = vector.extract_strided_slice %0 {offsets = [0, 7], sizes = [16, 1], strides = [1, 1]} : vector<16x8xi32> to vector<16x1xi32>
    %44 = vector.broadcast %43 : vector<16x1xi32> to vector<16x64xi32>
    %45 = arith.cmpi eq, %44, %1 : vector<16x64xi32>
    %46 = arith.extui %45 : vector<16x64xi1> to vector<16x64xi32>
    %47 = arith.sitofp %46 : vector<16x64xi32> to vector<16x64xf32>
    %48 = arith.addf %42, %47 : vector<16x64xf32>
    %c0_1 = arith.constant 0 : index
    %c0_2 = arith.constant 0 : index
    %49 = vector.load %arg2[%c0_1, %c0_2] : memref<64x128xf32, #tpu.memory_space<vmem>>, vector<64x128xf32>
    %cst = arith.constant dense<0.000000e+00> : vector<16x128xf32>
    %50 = tpu.matmul %48, %49, %cst {dimension_numbers = #tpu.dot_dimension_numbers<[1], [0], [0], [1], [0, 0, 1, 1], [], []>} : vector<16x64xf32>, vector<64x128xf32>, vector<16x128xf32> -> vector<16x128xf32>
    %c0_3 = arith.constant 0 : index
    %c0_4 = arith.constant 0 : index
    %51 = vector.load %arg3[%c0_3, %c0_4] : memref<16x128xf32, #tpu.memory_space<vmem>>, vector<16x128xf32>
    tpu.vector_store %arg3[%c0_3, %c0_4], %50 {strides = array<i32>} : memref<16x128xf32, #tpu.memory_space<vmem>>, vector<16x128xf32>,
    return
  }
  func.func @transform_0(%arg0: i32) -> (i32, i32) {
    %c0_i32 = arith.constant 0 : i32
    %c0_i32_0 = arith.constant 0 : i32
    return %arg0, %c0_i32 : i32, i32
  }
  func.func @transform_1(%arg0: i32) -> (i32, i32) {
    %c0_i32 = arith.constant 0 : i32
    %c0_i32_0 = arith.constant 0 : i32
    %c0_i32_1 = arith.constant 0 : i32
    return %c0_i32, %c0_i32_0 : i32, i32
  }
  func.func @transform_2(%arg0: i32) -> (i32, i32) {
    %c0_i32 = arith.constant 0 : i32
    %c0_i32_0 = arith.constant 0 : i32
    return %arg0, %c0_i32 : i32, i32
  }
}

</mosaic_0001>

<bundles_post_ra>
// kernel: tpu_custom_call.1
= control target key start
LH: loop header
LB: loop body
LE: loop exit
PB: predicated region body
PF: predicated region fallthrough
CT: control target
= control target key end

     0   :  { %7 = vsyncpa [#allocation3], 0  ;;  %s360_s0 = inlined_call_operand.vmem [shape: s32[16,8], index: 0, kind: input, shape index: {}]   ;;  %s361_s1 = inlined_call_operand.hbm [shape: f32[64,128], index: 1, kind: input, shape index: {}]   ;;  %s362_s2 = inlined_call_operand.hbm [shape: f32[16,128], index: 2, kind: output, shape index: {}]  }
   0x1   :  { %8 = vsyncpa [#allocation4], 0  ;;  %s15_s11 = sshll.u32 %s361_s1, 4  ;;  %s306_s12 = smov [#allocation2]   ;;  %s16_s11 = int_to_ptr.hbm [resolvable:$true] %s15_s11 }
   0x2   :  { %s17_s13 = sshll.u32 %s306_s12, 4  ;;  %s307_s14 = smov 128   ;;  %s18_s13 = int_to_ptr.vmem [resolvable:$true] %s17_s13 }
   0x3   :  { %s308_s15 = smov 8  }
   0x4   :  { %23 = dma.hbm_to_vmem [thread:$0]  %s16_s11, 1024, %s18_s13, [#allocation3], %s307_s14, %s307_s14, %s308_s15  }
   0x5   :  { %302 = dma.done.wait [#allocation3], 1024  }
   0x6   :  { %303 = vsyncadd [#allocation3], 4294966272  ;;  %v309_v0 = vmov 1   ;;  %v310_v1 = vmov 0   ;;  %v311_v2 = vmov 2   ;;  %v28_v3 = vld [vmem:[%s360_s0] sm:$0xff]  ;;  %v30_v26 = vlaneseq }
   0x7   :  { %241 = vset.pattern.permute.xlu1 %v309_v0  ;;  %240 = vset.pattern.permute.xlu0 %v310_v1  ;;  %v29_v4 = vld [vmem:[%s360_s0 + $0x8] sm:$0xff]  ;;  %v312_v5 = vmov 3   ;;  %v313_v6 = vmov 4   ;;  %v314_v7 = vmov 5   ;;  %v315_v8 = vmov 6   ;;  %v149_v12 = vld [vmem:[#allocation2 + $0x38] sm:$0xff] }
   0x8   :  { %242 = vset.pattern.permute.xlu2 %v311_v2  ;;  %45 = vperm.xlu1 %241, %v28_v3   ;;  %v316_v9 = vmov 7   ;;  %v148_v13 = vld [vmem:[#allocation2 + $0x30] sm:$0xff]  ;;  %v147_v14 = vld [vmem:[#allocation2 + $0x28] sm:$0xff]  ;;  %v146_v16 = vld [vmem:[#allocation2 + $0x20] sm:$0xff]  ;;  %v31_v27 = vand.u32 127, %v30_v26  ;;  %v317_v30 = vmov 0.0  }
   0x9   :  { %33 = vperm.xlu0 %240, %v28_v3   ;;  %59 = vperm.xlu2 %242, %v28_v3   ;;  %v145_v17 = vld [vmem:[#allocation2 + $0x18] sm:$0xff]  ;;  %v144_v18 = vld [vmem:[#allocation2 + $0x10] sm:$0xff]  ;;  %v143_v21 = vld [vmem:[#allocation2 + $0x8] sm:$0xff]  ;;  %vm150_vm12 = vcmask 523264   ;;  %s318_s0 = smov [#allocation5]   ;;  %s188_s22 = sshll.u32 %s362_s2, 4  ;;  %s189_s22 = int_to_ptr.hbm [resolvable:$true] %s188_s22 }
   0xa   :  { %219 = vmatpush.msra.mxu1 %v149_v12  ;;  %165 = vmatpush.msra.mxu0 %v149_v12  ;;  %v142_v22 = vld [vmem:[#allocation2] sm:$0xff]  ;;  %s186_s19 = sshll.u32 %s318_s0, 4  ;;  %s187_s19 = int_to_ptr.vmem [resolvable:$true] %s186_s19 }
   0xc   :  { %220 = vmatpush.msra.mxu1 %v148_v13  ;;  %166 = vmatpush.msra.mxu0 %v148_v13 }
   0xe   :  { %221 = vmatpush.msra.mxu1 %v147_v14  ;;  %167 = vmatpush.msra.mxu0 %v147_v14 }
  0x10   :  { %48 = vperm.xlu1 %241, %v29_v4   ;;  %222 = vmatpush.msra.mxu1 %v146_v16 }
  0x11   :  { %36 = vperm.xlu0 %240, %v29_v4   ;;  %62 = vperm.xlu2 %242, %v29_v4  }
  0x12   :  { %168 = vmatpush.msra.mxu0 %v146_v16  ;;  %223 = vmatpush.msra.mxu1 %v145_v17 }
  0x14   :  { %169 = vmatpush.msra.mxu0 %v145_v17  ;;  %224 = vmatpush.msra.mxu1 %v144_v18 }
  0x16   :  { %170 = vmatpush.msra.mxu0 %v144_v18  ;;  %225 = vmatpush.msra.mxu1 %v143_v21 }
  0x18   :  { %244 = vset.pattern.permute.xlu1 %v312_v5  ;;  %171 = vmatpush.msra.mxu0 %v143_v21 }
  0x19   :  { %243 = vset.pattern.permute.xlu0 %v312_v5  ;;  %76 = vperm.xlu1 %244, %v29_v4  }
  0x1a   :  { %73 = vperm.xlu0 %243, %v28_v3   ;;  %245 = vset.pattern.permute.xlu2 %v313_v6 }
  0x1b   :  { %87 = vperm.xlu2 %245, %v28_v3   ;;  %226 = vmatpush.msra.mxu1 %v142_v22 }
  0x1c   :  { %172 = vmatpush.msra.mxu0 %v142_v22 }
  0x21   :  { %246 = vset.pattern.permute.xlu1 %v313_v6 }
  0x22   :  { %248 = vset.pattern.permute.xlu0 %v314_v7  ;;  %90 = vperm.xlu1 %246, %v29_v4  }
  0x23   :  { %104 = vperm.xlu0 %248, %v29_v4   ;;  %247 = vset.pattern.permute.xlu2 %v314_v7 }
  0x24   :  { %101 = vperm.xlu2 %247, %v28_v3  }
  0x2a   :  { %249 = vset.pattern.permute.xlu1 %v315_v8 }
  0x2b   :  { %253 = vset.pattern.permute.xlu0 %v316_v9  ;;  %115 = vperm.xlu1 %249, %v28_v3  }
  0x2c   :  { %250 = vset.pattern.permute.xlu2 %v315_v8 }
  0x2d   :  { %118 = vperm.xlu2 %250, %v29_v4  }
  0x33   :  { %251 = vset.pattern.permute.xlu1 %v316_v9 }
  0x34   :  { %129 = vperm.xlu1 %251, %v28_v3  }
  0x35   :  { %252 = vset.pattern.permute.xlu2 %v316_v9 }
  0x36   :  { %132 = vperm.xlu2 %252, %v29_v4  }
  0x63   :  { %v346_v10 = vpop.permute.xlu2 %59 }
  0x64   :  { %vm64_vm9 = vcmp.eq.s32.totalorder %v346_v10, %v31_v27 }
  0x65   :  { %v205_v50 = vsel %vm64_vm9, 1.0, %v317_v30 }
  0x6b   :  { %v63_v11 = vpop.permute.xlu2 %62 }
  0x6c   :  { %vm65_vm2 = vcmp.eq.s32.totalorder %v63_v11, %v31_v27 }
  0x6d   :  { %v206_v35 = vsel %vm65_vm2, 1.0, %v317_v30 }
  0x75   :  { %v348_v15 = vpop.permute.xlu2 %87 }
  0x76   :  { %vm92_vm13 = vcmp.eq.s32.totalorder %v348_v15, %v31_v27 }
  0x77   :  { %v209_v58 = vsel %vm92_vm13, 1.0, %v317_v30 }
  0x7a   :  { %v46_v19 = vpop.permute.xlu1 %45 }
  0x7b   :  { %v34_v20 = vpop.permute.xlu0 %33  ;;  %vm50_vm4 = vcmp.eq.s32.totalorder %v46_v19, %v31_v27 }
  0x7c   :  { %vm38_vm5 = vcmp.eq.s32.totalorder %v34_v20, %v31_v27  ;;  %v203_v39 = vsel %vm50_vm4, 1.0, %v317_v30 }
  0x7d   :  { %v201_v40 = vsel %vm38_vm5, 1.0, %v317_v30 }
  0x7e   :  { %v102_v23 = vpop.permute.xlu2 %101  ;;  %v56_v46 = vadd.f32 %v203_v39, %v201_v40 }
  0x7f   :  { %vm106_vm14 = vcmp.eq.s32.totalorder %v102_v23, %v31_v27 }
  0x80   :  { %v70_v53 = vadd.f32 %v205_v50, %v56_v46  ;;  %v211_v60 = vsel %vm106_vm14, 1.0, %v317_v30 }
  0x82   :  { %v49_v24 = vpop.permute.xlu1 %48 }
  0x83   :  { %v37_v25 = vpop.permute.xlu0 %36  ;;  %vm51_vm0 = vcmp.eq.s32.totalorder %v49_v24, %v31_v27 }
  0x84   :  { %vm39_vm1 = vcmp.eq.s32.totalorder %v37_v25, %v31_v27  ;;  %v204_v31 = vsel %vm51_vm0, 1.0, %v317_v30 }
  0x85   :  { %v202_v32 = vsel %vm39_vm1, 1.0, %v317_v30 }
  0x86   :  { %v57_v34 = vadd.f32 %v204_v31, %v202_v32 }
  0x87   :  { %v119_v28 = vpop.permute.xlu2 %118 }
  0x88   :  { %v71_v37 = vadd.f32 %v206_v35, %v57_v34  ;;  %vm121_vm6 = vcmp.eq.s32.totalorder %v119_v28, %v31_v27 }
  0x89   :  { %v214_v48 = vsel %vm121_vm6, 1.0, %v317_v30 }
  0x8b   :  { %v77_v29 = vpop.permute.xlu1 %76 }
  0x8c   :  { %v74_v33 = vpop.permute.xlu0 %73  ;;  %vm79_vm3 = vcmp.eq.s32.totalorder %v77_v29, %v31_v27 }
  0x8d   :  { %v208_v36 = vsel %vm79_vm3, 1.0, %v317_v30  ;;  %vm78_vm10 = vcmp.eq.s32.totalorder %v74_v33, %v31_v27 }
  0x8e   :  { %v85_v43 = vadd.f32 %v208_v36, %v71_v37  ;;  %v207_v51 = vsel %vm78_vm10, 1.0, %v317_v30 }
  0x8f   :  { %v84_v55 = vadd.f32 %v207_v51, %v70_v53 }
  0x90   :  { %v133_v38 = vpop.permute.xlu2 %132 }
  0x91   :  { %vm135_vm11 = vcmp.eq.s32.totalorder %v133_v38, %v31_v27  ;;  %v98_v59 = vadd.f32 %v209_v58, %v84_v55 }
  0x92   :  { %v216_v52 = vsel %vm135_vm11, 1.0, %v317_v30 }
  0x93   :  { %v112_v62 = vadd.f32 %v211_v60, %v98_v59 }
  0x94   :  { %v91_v41 = vpop.permute.xlu1 %90 }
  0x95   :  { %v105_v42 = vpop.permute.xlu0 %104  ;;  %vm93_vm7 = vcmp.eq.s32.totalorder %v91_v41, %v31_v27 }
  0x96   :  { %vm107_vm8 = vcmp.eq.s32.totalorder %v105_v42, %v31_v27  ;;  %v210_v44 = vsel %vm93_vm7, 1.0, %v317_v30 }
  0x97   :  { %v212_v45 = vsel %vm107_vm8, 1.0, %v317_v30  ;;  %v99_v47 = vadd.f32 %v210_v44, %v85_v43 }
  0x99   :  { %v113_v49 = vadd.f32 %v212_v45, %v99_v47 }
  0x9b   :  { %v127_v54 = vadd.f32 %v214_v48, %v113_v49 }
  0x9d   :  { %v141_v56 = vadd.f32 %v216_v52, %v127_v54  ;;  %v116_v57 = vpop.permute.xlu1 %115 }
  0x9e   :  { %vm120_vm15 = vcmp.eq.s32.totalorder %v116_v57, %v31_v27 }
  0x9f   :  { %218 = vmatmul.msk.f32.vlgmr.msra.gmra.mxu1 %vm150_vm12, %v141_v56  ;;  %v213_v61 = vsel %vm120_vm15, 1.0, %v317_v30 }
  0xa0   :  { %v126_v0 = vadd.f32 %v213_v61, %v112_v62 }
  0xa6   :  { %v130_v63 = vpop.permute.xlu1 %129 }
  0xa7   :  { %vm134_vm0 = vcmp.eq.s32.totalorder %v130_v63, %v31_v27 }
  0xa8   :  { %v215_v1 = vsel %vm134_vm0, 1.0, %v317_v30 }
  0xa9   :  { %v140_v2 = vadd.f32 %v215_v1, %v126_v0 }
  0xab   :  { %217 = vmatmul.msk.f32.vlgmr.msra.gmra.mxu0 %vm150_vm12, %v140_v2 }
 0x11c   :  { %v177_v3 = vpop.f32.mrf.mxu1 }
 0x11d   :  { %181 = vst [vmem:[#allocation5 + $0x8] sm:$0xff] %v177_v3 }
 0x128   :  { %v174_v4 = vpop.f32.mrf.mxu0 }
 0x129   :  { %180 = vst [vmem:[#allocation5] sm:$0xff] %v174_v4 }
 0x12a   :  { %194 = dma.vmem_to_hbm [thread:$0]  %s187_s19, 256, %s189_s22, [#allocation4], %s307_s14, %s307_s14, %s308_s15  }
 0x12b   :  { %304 = dma.done.wait [#allocation4], 256  }
 0x12c   :  { %305 = vsyncadd [#allocation4], 4294967040 }
 0x12d   :  { %199 = vsyncpa [#allocation3], 1 }
 0x12e   :  { %200 = vsyncpa [#allocation4], 1 }

</bundles_post_ra>
